<compile_context>
chip_gen: v7x
topology: tpu7x:2x2x1
jax: 0.10.0
libtpu: 0.0.40
codegen_flags: <defaults>
</compile_context>

<pallas_src>
import functools
from collections import defaultdict

import jax
import jax.numpy as jnp
from jax import lax
from jax.experimental import pallas as pl
from jax.experimental.pallas import tpu as pltpu


def _round_up(x, m):
    return (x + m - 1) // m * m


# -----------------------------------------------------------------------------
# SimCLR contrastive loss (batched pairs, tiled online logsumexp)
# -----------------------------------------------------------------------------

def _contrastive_kernel(zq_ref, zk_ref, zp_ref, out_ref, m_sc, l_sc, *,
                        batch, half_pad, tile, nq, padded):
    qi = pl.program_id(1)
    ki = pl.program_id(2)
    half_blocks = half_pad // tile
    neg_big = jnp.float32(-1e30)

    @pl.when(ki == 0)
    def _():
        m_sc[...] = jnp.full_like(m_sc, neg_big)
        l_sc[...] = jnp.zeros_like(l_sc)

    # Operands are pre-normalized in the wrapper; 1/temperature is folded into
    # zq, so the MXU contraction on D directly yields the scaled cosine logits.
    s = lax.dot_general(zq_ref[...], zk_ref[...],
                        dimension_numbers=(((1,), (1,)), ((), ())),
                        preferred_element_type=jnp.float32)

    def _online_update(s_val):
        m_prev = m_sc[...]
        m_new = jnp.maximum(m_prev, jnp.max(s_val, axis=-1, keepdims=True))
        alpha = jnp.exp(m_prev - m_new)
        l_sc[...] = alpha * l_sc[...] + jnp.sum(jnp.exp(s_val - m_new), -1,
                                                keepdims=True)
        m_sc[...] = m_new

    # Masking is only needed on diagonal tiles (self-similarity) and -- when the
    # batch is padded -- on the last key tile of each half (padded columns).
    if padded:
        needs_mask = (qi == ki) | (ki == half_blocks - 1) | (ki == nq - 1)
    else:
        needs_mask = qi == ki

    @pl.when(needs_mask)
    def _():
        row = qi * tile + lax.broadcasted_iota(jnp.int32, (tile, tile), 0)
        col = ki * tile + lax.broadcasted_iota(jnp.int32, (tile, tile), 1)
        valid = row != col
        if padded:
            col_in_half = col - jnp.where(col >= half_pad, half_pad, 0)
            valid = valid & (col_in_half < batch)
        # NOTE: a fully-masked key tile is harmless: as soon as any real column
        # sets a finite running max, exp(-1e30 - m) underflows to exactly 0 and
        # the bogus exp(0) counts from the all-masked tile are wiped out.
        _online_update(jnp.where(valid, s, neg_big))

    @pl.when(jnp.logical_not(needs_mask))
    def _():
        _online_update(s)

    @pl.when(ki == nq - 1)
    def _():
        lse = m_sc[...] + jnp.log(l_sc[...])
        # Positive logit: rowwise dot with the partner tile (row (r + B) mod N);
        # inv_temp is already folded into zq.
        pos = jnp.sum(zq_ref[...].astype(jnp.float32) *
                      zp_ref[...].astype(jnp.float32), -1, keepdims=True)
        per_row = lse - pos
        if padded:
            r = qi * tile + lax.broadcasted_iota(jnp.int32, (tile, 1), 0)
            r_in_half = r - jnp.where(r >= half_pad, half_pad, 0)
            per_row = jnp.where(r_in_half < batch, per_row, 0.0)
        # Narrow (tile,1) store happens only once per query tile (finalize), so
        # the masked-vst cost is negligible; kept for the proven-safe layout.
        out_ref[...] = per_row


def simclr_contrastive_loss_batched(z_i_list, z_j_list, temperature, *,
                                    tile_target=256):
    """Sum of CMCV2Loss.forward_contrastive_loss over same-shape pairs, fused
    into a single pallas_call with grid (num_pairs, nq, nq)."""
    num_pairs = len(z_i_list)
    b, d = z_i_list[0].shape

    # Tile & padding: one block per half for small batches; MXU-matched 256
    # tiles for large ones (kept on v7x too -- VMEM is relieved by the explicit
    # limit below, not by shrinking the tile).
    if b <= tile_target:
        tile = _round_up(b, 8)
        b_pad = tile
    else:
        tile = tile_target
        b_pad = _round_up(b, tile)
    d_pad = _round_up(d, 128)
    n_pad = 2 * b_pad
    nq = n_pad // tile
    half_blocks = b_pad // tile
    padded = b_pad != b

    zi = jnp.pad(jnp.stack(z_i_list), ((0, 0), (0, b_pad - b), (0, d_pad - d)))
    zj = jnp.pad(jnp.stack(z_j_list), ((0, 0), (0, b_pad - b), (0, d_pad - d)))
    z = jnp.concatenate([zi, zj], axis=1)               # (P, n_pad, d_pad)

    # Hoisted normalization (was previously redone per (qi, ki) grid step) and
    # 1/temperature fold into the query operand.
    # NOTE(eps): each squared row norm is clamped at 1e-16 vs torch clamping the
    # norm *product* at 1e-8 -- identical for non-degenerate rows.
    zf = z.astype(jnp.float32)
    inv_norm = lax.rsqrt(jnp.maximum(jnp.sum(zf * zf, -1, keepdims=True),
                                     jnp.float32(1e-16)))
    z_norm = (zf * inv_norm).astype(z.dtype)
    z_q = (zf * (inv_norm * jnp.float32(1.0 / float(temperature)))).astype(z.dtype)

    kernel = functools.partial(
        _contrastive_kernel, batch=int(b), half_pad=int(b_pad), tile=int(tile),
        nq=int(nq), padded=bool(padded))

    # Explicit VMEM budget: buffered operand blocks + (T,T) f32 temporaries +
    # scratch + slack (keeps the intended tile on v5e's 16 MiB scoped default).
    itemsize = z_q.dtype.itemsize
    blk = tile * d_pad * itemsize
    vmem_need = 7 * blk + 8 * tile * tile * 4 + 8 * tile * 4 + (4 << 20)
    vmem_limit = int(min(max(vmem_need, 32 << 20), 96 << 20))

    zk_kwargs = {}
    if nq >= 4 and d_pad <= 256:
        # Deeper buffering on the streamed key operand when per-step compute is
        # too small to hide DMA latency under the default 2-deep pipeline.
        zk_kwargs["pipeline_mode"] = pl.Buffered(3)

    per_row = pl.pallas_call(
        kernel,
        out_shape=jax.ShapeDtypeStruct((num_pairs, n_pad, 1), jnp.float32),
        grid_spec=pltpu.PrefetchScalarGridSpec(
            num_scalar_prefetch=0,
            grid=(num_pairs, nq, nq),
            in_specs=[
                pl.BlockSpec((None, tile, d_pad),              # query tile
                             lambda p, qi, ki: (p, qi, 0)),
                pl.BlockSpec((None, tile, d_pad),              # key tile
                             lambda p, qi, ki: (p, ki, 0), **zk_kwargs),
                pl.BlockSpec((None, tile, d_pad),              # partner tile
                             lambda p, qi, ki: (p, (qi + half_blocks) % nq, 0)),
            ],
            out_specs=pl.BlockSpec((None, tile, 1), lambda p, qi, ki: (p, qi, 0)),
            scratch_shapes=[pltpu.VMEM((tile, 1), jnp.float32),   # running max
                            pltpu.VMEM((tile, 1), jnp.float32)],  # running sum
        ),
        compiler_params=pltpu.CompilerParams(
            dimension_semantics=("parallel", "parallel", "arbitrary"),
            vmem_limit_bytes=vmem_limit),
    )(z_q, z_norm, z_norm)

    # Each pair's loss = CrossEntropy(sum)/N over its 2B real rows; padded rows
    # are zeroed in-kernel, so one global sum covers all fused pairs.
    return jnp.sum(per_row) / jnp.float32(2 * b)


def simclr_contrastive_loss(z_i, z_j, temperature, *, tile_target=256):
    """== CMCV2Loss.forward_contrastive_loss(z_i, z_j)."""
    return simclr_contrastive_loss_batched([z_i], [z_j], temperature,
                                           tile_target=tile_target)


# -----------------------------------------------------------------------------
# Orthogonality loss: CosineEmbeddingLoss(target=1, reduction='mean')
# -----------------------------------------------------------------------------

def _ortho_kernel(x1_ref, x2_ref, out_ref, *, batch, tile_b, padded):
    x1 = x1_ref[...].astype(jnp.float32)
    x2 = x2_ref[...].astype(jnp.float32)
    dot = jnp.sum(x1 * x2, -1, keepdims=True)
    nsq = (jnp.sum(x1 * x1, -1, keepdims=True) *
           jnp.sum(x2 * x2, -1, keepdims=True))
    # cos = dot / max(|x1|*|x2|, 1e-8), computed with a single rsqrt.
    cos = dot * lax.rsqrt(jnp.maximum(nsq, jnp.float32(1e-16)))
    per_row = 1.0 - cos
    if padded:
        r = pl.program_id(1) * tile_b + lax.broadcasted_iota(jnp.int32,
                                                             (tile_b, 1), 0)
        per_row = jnp.where(r < batch, per_row, 0.0)
    out_ref[...] = per_row


def orthogonality_loss_batched(e1_list, e2_list):
    """Sum of CMCV2Loss.forward_orthogonality_loss over same-shape pairs,
    fused into a single row-tiled pallas_call."""
    num_pairs = len(e1_list)
    b, d = e1_list[0].shape
    itemsize = e1_list[0].dtype.itemsize
    # Row tile sized so 2 inputs x 2 pipeline buffers stay well under VMEM.
    rows_cap = max(8, ((8 << 20) // max(1, 4 * d * itemsize)) // 8 * 8)
    tile_b = int(max(8, min(512, rows_cap, _round_up(b, 8))))
    b_pad = _round_up(b, tile_b)
    padded = b_pad != b

    x1 = jnp.pad(jnp.stack(e1_list), ((0, 0), (0, b_pad - b), (0, 0)))
    x2 = jnp.pad(jnp.stack(e2_list), ((0, 0), (0, b_pad - b), (0, 0)))

    kernel = functools.partial(_ortho_kernel, batch=int(b), tile_b=int(tile_b),
                               padded=bool(padded))
    per_row = pl.pallas_call(
        kernel,
        out_shape=jax.ShapeDtypeStruct((num_pairs, b_pad, 1), jnp.float32),
        grid_spec=pltpu.PrefetchScalarGridSpec(
            num_scalar_prefetch=0,
            grid=(num_pairs, b_pad // tile_b),
            in_specs=[pl.BlockSpec((None, tile_b, d), lambda p, bi: (p, bi, 0)),
                      pl.BlockSpec((None, tile_b, d), lambda p, bi: (p, bi, 0))],
            out_specs=pl.BlockSpec((None, tile_b, 1), lambda p, bi: (p, bi, 0)),
        ),
        compiler_params=pltpu.CompilerParams(
            dimension_semantics=("parallel", "parallel")),
    )(x1, x2)
    return jnp.sum(per_row) / jnp.float32(b)


def orthogonality_loss(e1, e2):
    """== CMCV2Loss.forward_orthogonality_loss(e1, e2): mean(1 - cos(e1, e2))."""
    return orthogonality_loss_batched([e1], [e2])


# -----------------------------------------------------------------------------
# Full CMCV2Loss forward (same-shape pairs fused into batched pallas_calls)
# -----------------------------------------------------------------------------

def cmcv2_loss(mod_features1, mod_features2, modality_names, temperature):
    """Mirrors CMCV2Loss.forward: shared + private contrastive + orthogonality."""
    split1, split2 = {}, {}
    for mod in modality_names:
        d = mod_features1[mod].shape[1]
        split1[mod] = {"shared": mod_features1[mod][:, : d // 2],
                       "private": mod_features1[mod][:, d // 2:]}
        d = mod_features2[mod].shape[1]
        split2[mod] = {"shared": mod_features2[mod][:, : d // 2],
                       "private": mod_features2[mod][:, d // 2:]}

    # Collect all pairs first, then fuse same-shape pairs into single launches.
    contrastive_pairs = []
    for split in (split1, split2):
        for i, m1 in enumerate(modality_names):
            for m2 in modality_names[i + 1:]:
                contrastive_pairs.append((split[m1]["shared"], split[m2]["shared"]))
    for mod in modality_names:
        contrastive_pairs.append((split1[mod]["private"], split2[mod]["private"]))

    ortho_pairs = []
    for split in (split1, split2):
        for i, mod in enumerate(modality_names):
            ortho_pairs.append((split[mod]["shared"], split[mod]["private"]))
            for m2 in modality_names[i + 1:]:
                ortho_pairs.append((split[mod]["private"], split[m2]["private"]))

    loss = jnp.float32(0.0)

    cgroups = defaultdict(list)
    for zi, zj in contrastive_pairs:
        cgroups[(zi.shape, str(zi.dtype))].append((zi, zj))
    for pairs in cgroups.values():
        loss = loss + simclr_contrastive_loss_batched(
            [p[0] for p in pairs], [p[1] for p in pairs], temperature)

    ogroups = defaultdict(list)
    for e1, e2 in ortho_pairs:
        ogroups[(e1.shape, str(e1.dtype))].append((e1, e2))
    for pairs in ogroups.values():
        loss = loss + orthogonality_loss_batched(
            [p[0] for p in pairs], [p[1] for p in pairs])
    return loss


# -----------------------------------------------------------------------------
# Pure-JAX reference (mirrors the PyTorch forward) for validation.
# -----------------------------------------------------------------------------

def _ref_contrastive(z_i, z_j, temperature):
    b = z_i.shape[0]
    n = 2 * b
    z = jnp.concatenate([z_i, z_j], 0).astype(jnp.float32)
    norms = jnp.linalg.norm(z, axis=-1, keepdims=True)
    sim = (z @ z.T) / jnp.maximum(norms * norms.T, 1e-8) / temperature
    pos = jnp.concatenate([jnp.diagonal(sim, b), jnp.diagonal(sim, -b)], 0)
    row = jnp.arange(n)[:, None]
    col = jnp.arange(n)[None, :]
    lse = jax.scipy.special.logsumexp(jnp.where(row == col, -jnp.inf, sim), axis=-1)
    return jnp.sum(lse - pos) / n


def _ref_ortho(e1, e2):
    e1 = e1.astype(jnp.float32)
    e2 = e2.astype(jnp.float32)
    num = jnp.sum(e1 * e2, -1)
    den = jnp.maximum(jnp.linalg.norm(e1, axis=-1) * jnp.linalg.norm(e2, axis=-1), 1e-8)
    return jnp.mean(1.0 - num / den)


def _ref_cmcv2(f1, f2, mods, temperature):
    s1, s2 = {}, {}
    for m in mods:
        d = f1[m].shape[1]
        s1[m] = {"shared": f1[m][:, : d // 2], "private": f1[m][:, d // 2:]}
        d = f2[m].shape[1]
        s2[m] = {"shared": f2[m][:, : d // 2], "private": f2[m][:, d // 2:]}
    loss = jnp.float32(0.0)
    for s in (s1, s2):
        for i, m1 in enumerate(mods):
            for m2 in mods[i + 1:]:
                loss = loss + _ref_contrastive(s[m1]["shared"], s[m2]["shared"], temperature)
    for m in mods:
        loss = loss + _ref_contrastive(s1[m]["private"], s2[m]["private"], temperature)
    for s in (s1, s2):
        for i, m in enumerate(mods):
            loss = loss + _ref_ortho(s[m]["shared"], s[m]["private"])
            for m2 in mods[i + 1:]:
                loss = loss + _ref_ortho(s[m]["private"], s[m2]["private"])
    return loss


if __name__ == "__main__":
    batch = 4        # B -> N = 8 rows per contrastive similarity matrix
    hidden = 32      # per-modality feature dim (shared/private halves = 16 each)
    temperature = 0.2
    modalities = ("audio", "seismic")

    key = jax.random.PRNGKey(0)
    feats1, feats2 = {}, {}
    for mod in modalities:
        key, k1, k2 = jax.random.split(key, 3)
        feats1[mod] = jax.random.normal(k1, (batch, hidden), dtype=jnp.float32)
        feats2[mod] = jax.random.normal(k2, (batch, hidden), dtype=jnp.float32)

    loss = cmcv2_loss(feats1, feats2, modalities, temperature)
    jax.block_until_ready(loss)
    ref = _ref_cmcv2(feats1, feats2, modalities, temperature)
    assert jnp.isfinite(loss), "kernel produced non-finite loss"
    assert jnp.allclose(loss, ref, rtol=2e-4, atol=2e-4), (loss, ref)

    # Also exercise the padded-row / boundary-column masked path.
    key, k1, k2 = jax.random.split(key, 3)
    zi = jax.random.normal(k1, (12, 20), dtype=jnp.float32)
    zj = jax.random.normal(k2, (12, 20), dtype=jnp.float32)
    c = simclr_contrastive_loss(zi, zj, temperature)
    jax.block_until_ready(c)
    cref = _ref_contrastive(zi, zj, temperature)
    assert jnp.allclose(c, cref, rtol=2e-4, atol=2e-4), (c, cref)

    print("KERNEL_OK")
</pallas_src>

<mosaic_0001>
module attributes {stable_mosaic.version = 11 : i64} {
  func.func @_contrastive_kernel(%arg0: i32, %arg1: i32, %arg2: i32, %arg3: memref<1x8x128xf32, #tpu.memory_space<vmem>>, %arg4: memref<1x8x128xf32, #tpu.memory_space<vmem>>, %arg5: memref<1x8x128xf32, #tpu.memory_space<vmem>>, %arg6: memref<1x8x1xf32, #tpu.memory_space<vmem>>, %arg7: memref<8x1xf32, #tpu.memory_space<vmem>>, %arg8: memref<8x1xf32, #tpu.memory_space<vmem>>) attributes {dimension_semantics = [#tpu.dimension_semantics<parallel>, #tpu.dimension_semantics<parallel>, #tpu.dimension_semantics<arbitrary>], iteration_bounds = array<i64: 4, 2, 2>, scalar_prefetch = 0 : i64, scratch_operands = 2 : i64, tpu.core_type = #tpu.core_type<tc>, window_params = [{transform_indices = @transform_0, window_bounds = array<i64: 1, 8, 128>}, {transform_indices = @transform_1, window_bounds = array<i64: 1, 8, 128>}, {transform_indices = @transform_2, window_bounds = array<i64: 1, 8, 128>}, {transform_indices = @transform_3, window_bounds = array<i64: 1, 8, 1>}]} {
    %c0_i32 = arith.constant 0 : i32
    %0 = arith.cmpi eq, %arg2, %c0_i32 : i32
    %1 = arith.extui %0 : i1 to i32
    %cst = arith.constant -1.000000e+30 : f32
    %c0_i32_0 = arith.constant 0 : i32
    %2 = arith.cmpi ne, %1, %c0_i32_0 : i32
    scf.if %2 {
      %21 = vector.broadcast %cst : f32 to vector<8x1xf32>
      %c0_13 = arith.constant 0 : index
      %c0_14 = arith.constant 0 : index
      %22 = vector.load %arg7[%c0_13, %c0_14] : memref<8x1xf32, #tpu.memory_space<vmem>>, vector<8x1xf32>
      tpu.vector_store %arg7[%c0_13, %c0_14], %21 {strides = array<i32>} : memref<8x1xf32, #tpu.memory_space<vmem>>, vector<8x1xf32>,
      %cst_15 = arith.constant 0.000000e+00 : f32
      %23 = vector.broadcast %cst_15 : f32 to vector<8x1xf32>
      %c0_16 = arith.constant 0 : index
      %c0_17 = arith.constant 0 : index
      %24 = vector.load %arg8[%c0_16, %c0_17] : memref<8x1xf32, #tpu.memory_space<vmem>>, vector<8x1xf32>
      tpu.vector_store %arg8[%c0_16, %c0_17], %23 {strides = array<i32>} : memref<8x1xf32, #tpu.memory_space<vmem>>, vector<8x1xf32>,
    } else {
    }
    %c0 = arith.constant 0 : index
    %c0_1 = arith.constant 0 : index
    %c0_2 = arith.constant 0 : index
    %3 = vector.load %arg3[%c0, %c0_1, %c0_2] : memref<1x8x128xf32, #tpu.memory_space<vmem>>, vector<1x8x128xf32>
    %4 = vector.shape_cast %3 : vector<1x8x128xf32> to vector<8x128xf32>
    %c0_3 = arith.constant 0 : index
    %c0_4 = arith.constant 0 : index
    %c0_5 = arith.constant 0 : index
    %5 = vector.load %arg4[%c0_3, %c0_4, %c0_5] : memref<1x8x128xf32, #tpu.memory_space<vmem>>, vector<1x8x128xf32>
    %6 = vector.shape_cast %5 : vector<1x8x128xf32> to vector<8x128xf32>
    %cst_6 = arith.constant dense<0.000000e+00> : vector<8x8xf32>
    %7 = tpu.matmul %4, %6, %cst_6 {dimension_numbers = #tpu.dot_dimension_numbers<[1], [1], [0], [0], [0, 0, 1, 0], [], []>} : vector<8x128xf32>, vector<8x128xf32>, vector<8x8xf32> -> vector<8x8xf32>
    %8 = arith.cmpi eq, %arg1, %arg2 : i32
    %c0_i32_7 = arith.constant 0 : i32
    %9 = arith.cmpi eq, %arg2, %c0_i32_7 : i32
    %10 = arith.ori %8, %9 : i1
    %c1_i32 = arith.constant 1 : i32
    %11 = arith.cmpi eq, %arg2, %c1_i32 : i32
    %12 = arith.ori %10, %11 : i1
    %13 = arith.extui %12 : i1 to i32
    %cst_8 = arith.constant -1.000000e+30 : f32
    %c0_i32_9 = arith.constant 0 : i32
    %14 = arith.cmpi ne, %13, %c0_i32_9 : i32
    scf.if %14 {
      %c8_i32 = arith.constant 8 : i32
      %21 = arith.muli %arg1, %c8_i32 : i32
      %22 = tpu.iota {dimensions = array<i32: 0>} : vector<8x8xi32>
      %23 = vector.broadcast %21 : i32 to vector<8x8xi32>
      %24 = arith.addi %23, %22 : vector<8x8xi32>
      %c8_i32_13 = arith.constant 8 : i32
      %25 = arith.muli %arg2, %c8_i32_13 : i32
      %26 = tpu.iota {dimensions = array<i32: 1>} : vector<8x8xi32>
      %27 = vector.broadcast %25 : i32 to vector<8x8xi32>
      %28 = arith.addi %27, %26 : vector<8x8xi32>
      %29 = arith.cmpi ne, %24, %28 : vector<8x8xi32>
      %c8_i32_14 = arith.constant 8 : i32
      %30 = vector.broadcast %c8_i32_14 : i32 to vector<8x8xi32>
      %31 = arith.cmpi sge, %28, %30 : vector<8x8xi32>
      %c8_i32_15 = arith.constant 8 : i32
      %c0_i32_16 = arith.constant 0 : i32
      %32 = vector.broadcast %c8_i32_15 : i32 to vector<8x8xi32>
      %33 = vector.broadcast %c0_i32_16 : i32 to vector<8x8xi32>
      %34 = arith.select %31, %32, %33 : vector<8x8xi1>, vector<8x8xi32>
      %35 = arith.subi %28, %34 : vector<8x8xi32>
      %c4_i32 = arith.constant 4 : i32
      %36 = vector.broadcast %c4_i32 : i32 to vector<8x8xi32>
      %37 = arith.cmpi slt, %35, %36 : vector<8x8xi32>
      %38 = arith.andi %29, %37 : vector<8x8xi1>
      %39 = vector.broadcast %cst_8 : f32 to vector<8x8xf32>
      %40 = arith.select %38, %7, %39 : vector<8x8xi1>, vector<8x8xf32>
      %c0_17 = arith.constant 0 : index
      %c0_18 = arith.constant 0 : index
      %41 = vector.load %arg7[%c0_17, %c0_18] : memref<8x1xf32, #tpu.memory_space<vmem>>, vector<8x1xf32>
      %cst_19 = arith.constant dense<0xFF800000> : vector<8xf32>
      %42 = vector.multi_reduction <maximumf>, %40, %cst_19 [1] : vector<8x8xf32> to vector<8xf32>
      %43 = vector.shape_cast %42 : vector<8xf32> to vector<8x1xf32>
      %44 = arith.maximumf %41, %43 : vector<8x1xf32>
      %45 = arith.subf %41, %44 : vector<8x1xf32>
      %46 = math.exp %45 : vector<8x1xf32>
      %c0_20 = arith.constant 0 : index
      %c0_21 = arith.constant 0 : index
      %47 = vector.load %arg8[%c0_20, %c0_21] : memref<8x1xf32, #tpu.memory_space<vmem>>, vector<8x1xf32>
      %48 = arith.mulf %46, %47 : vector<8x1xf32>
      %49 = vector.broadcast %44 : vector<8x1xf32> to vector<8x8xf32>
      %50 = arith.subf %40, %49 : vector<8x8xf32>
      %51 = math.exp %50 : vector<8x8xf32>
      %cst_22 = arith.constant dense<0.000000e+00> : vector<8xf32>
      %52 = vector.multi_reduction <add>, %51, %cst_22 [1] : vector<8x8xf32> to vector<8xf32>
      %53 = vector.shape_cast %52 : vector<8xf32> to vector<8x1xf32>
      %54 = arith.addf %48, %53 : vector<8x1xf32>
      %c0_23 = arith.constant 0 : index
      %c0_24 = arith.constant 0 : index
      %55 = vector.load %arg8[%c0_23, %c0_24] : memref<8x1xf32, #tpu.memory_space<vmem>>, vector<8x1xf32>
      tpu.vector_store %arg8[%c0_23, %c0_24], %54 {strides = array<i32>} : memref<8x1xf32, #tpu.memory_space<vmem>>, vector<8x1xf32>,
      %c0_25 = arith.constant 0 : index
      %c0_26 = arith.constant 0 : index
      %56 = vector.load %arg7[%c0_25, %c0_26] : memref<8x1xf32, #tpu.memory_space<vmem>>, vector<8x1xf32>
      tpu.vector_store %arg7[%c0_25, %c0_26], %44 {strides = array<i32>} : memref<8x1xf32, #tpu.memory_space<vmem>>, vector<8x1xf32>,
    } else {
    }
    %true = arith.constant true
    %15 = arith.xori %12, %true : i1
    %16 = arith.extui %15 : i1 to i32
    %c0_i32_10 = arith.constant 0 : i32
    %17 = arith.cmpi ne, %16, %c0_i32_10 : i32
    scf.if %17 {
      %c0_13 = arith.constant 0 : index
      %c0_14 = arith.constant 0 : index
      %21 = vector.load %arg7[%c0_13, %c0_14] : memref<8x1xf32, #tpu.memory_space<vmem>>, vector<8x1xf32>
      %cst_15 = arith.constant dense<0xFF800000> : vector<8xf32>
      %22 = vector.multi_reduction <maximumf>, %7, %cst_15 [1] : vector<8x8xf32> to vector<8xf32>
      %23 = vector.shape_cast %22 : vector<8xf32> to vector<8x1xf32>
      %24 = arith.maximumf %21, %23 : vector<8x1xf32>
      %25 = arith.subf %21, %24 : vector<8x1xf32>
      %26 = math.exp %25 : vector<8x1xf32>
      %c0_16 = arith.constant 0 : index
      %c0_17 = arith.constant 0 : index
      %27 = vector.load %arg8[%c0_16, %c0_17] : memref<8x1xf32, #tpu.memory_space<vmem>>, vector<8x1xf32>
      %28 = arith.mulf %26, %27 : vector<8x1xf32>
      %29 = vector.broadcast %24 : vector<8x1xf32> to vector<8x8xf32>
      %30 = arith.subf %7, %29 : vector<8x8xf32>
      %31 = math.exp %30 : vector<8x8xf32>
      %cst_18 = arith.constant dense<0.000000e+00> : vector<8xf32>
      %32 = vector.multi_reduction <add>, %31, %cst_18 [1] : vector<8x8xf32> to vector<8xf32>
      %33 = vector.shape_cast %32 : vector<8xf32> to vector<8x1xf32>
      %34 = arith.addf %28, %33 : vector<8x1xf32>
      %c0_19 = arith.constant 0 : index
      %c0_20 = arith.constant 0 : index
      %35 = vector.load %arg8[%c0_19, %c0_20] : memref<8x1xf32, #tpu.memory_space<vmem>>, vector<8x1xf32>
      tpu.vector_store %arg8[%c0_19, %c0_20], %34 {strides = array<i32>} : memref<8x1xf32, #tpu.memory_space<vmem>>, vector<8x1xf32>,
      %c0_21 = arith.constant 0 : index
      %c0_22 = arith.constant 0 : index
      %36 = vector.load %arg7[%c0_21, %c0_22] : memref<8x1xf32, #tpu.memory_space<vmem>>, vector<8x1xf32>
      tpu.vector_store %arg7[%c0_21, %c0_22], %24 {strides = array<i32>} : memref<8x1xf32, #tpu.memory_space<vmem>>, vector<8x1xf32>,
    } else {
    }
    %c1_i32_11 = arith.constant 1 : i32
    %18 = arith.cmpi eq, %arg2, %c1_i32_11 : i32
    %19 = arith.extui %18 : i1 to i32
    %c0_i32_12 = arith.constant 0 : i32
    %20 = arith.cmpi ne, %19, %c0_i32_12 : i32
    scf.if %20 {
      %c0_13 = arith.constant 0 : index
      %c0_14 = arith.constant 0 : index
      %21 = vector.load %arg7[%c0_13, %c0_14] : memref<8x1xf32, #tpu.memory_space<vmem>>, vector<8x1xf32>
      %c0_15 = arith.constant 0 : index
      %c0_16 = arith.constant 0 : index
      %22 = vector.load %arg8[%c0_15, %c0_16] : memref<8x1xf32, #tpu.memory_space<vmem>>, vector<8x1xf32>
      %23 = math.log %22 : vector<8x1xf32>
      %24 = arith.addf %21, %23 : vector<8x1xf32>
      %c0_17 = arith.constant 0 : index
      %c0_18 = arith.constant 0 : index
      %c0_19 = arith.constant 0 : index
      %25 = vector.load %arg3[%c0_17, %c0_18, %c0_19] : memref<1x8x128xf32, #tpu.memory_space<vmem>>, vector<1x8x128xf32>
      %26 = vector.shape_cast %25 : vector<1x8x128xf32> to vector<8x128xf32>
      %c0_20 = arith.constant 0 : index
      %c0_21 = arith.constant 0 : index
      %c0_22 = arith.constant 0 : index
      %27 = vector.load %arg5[%c0_20, %c0_21, %c0_22] : memref<1x8x128xf32, #tpu.memory_space<vmem>>, vector<1x8x128xf32>
      %28 = vector.shape_cast %27 : vector<1x8x128xf32> to vector<8x128xf32>
      %29 = arith.mulf %26, %28 : vector<8x128xf32>
      %cst_23 = arith.constant dense<0.000000e+00> : vector<8xf32>
      %30 = vector.multi_reduction <add>, %29, %cst_23 [1] : vector<8x128xf32> to vector<8xf32>
      %31 = vector.shape_cast %30 : vector<8xf32> to vector<8x1xf32>
      %32 = arith.subf %24, %31 : vector<8x1xf32>
      %c8_i32 = arith.constant 8 : i32
      %33 = arith.muli %arg1, %c8_i32 : i32
      %34 = tpu.iota {dimensions = array<i32: 0>} : vector<8x1xi32>
      %35 = vector.broadcast %33 : i32 to vector<8x1xi32>
      %36 = arith.addi %35, %34 : vector<8x1xi32>
      %c8_i32_24 = arith.constant 8 : i32
      %37 = vector.broadcast %c8_i32_24 : i32 to vector<8x1xi32>
      %38 = arith.cmpi sge, %36, %37 : vector<8x1xi32>
      %c8_i32_25 = arith.constant 8 : i32
      %c0_i32_26 = arith.constant 0 : i32
      %39 = vector.broadcast %c8_i32_25 : i32 to vector<8x1xi32>
      %40 = vector.broadcast %c0_i32_26 : i32 to vector<8x1xi32>
      %41 = arith.select %38, %39, %40 : vector<8x1xi1>, vector<8x1xi32>
      %42 = arith.subi %36, %41 : vector<8x1xi32>
      %c4_i32 = arith.constant 4 : i32
      %43 = vector.broadcast %c4_i32 : i32 to vector<8x1xi32>
      %44 = arith.cmpi slt, %42, %43 : vector<8x1xi32>
      %cst_27 = arith.constant 0.000000e+00 : f32
      %45 = vector.broadcast %cst_27 : f32 to vector<8x1xf32>
      %46 = arith.select %44, %32, %45 : vector<8x1xi1>, vector<8x1xf32>
      %c0_28 = arith.constant 0 : index
      %c0_29 = arith.constant 0 : index
      %c0_30 = arith.constant 0 : index
      %47 = vector.load %arg6[%c0_28, %c0_29, %c0_30] : memref<1x8x1xf32, #tpu.memory_space<vmem>>, vector<1x8x1xf32>
      %48 = vector.shape_cast %47 : vector<1x8x1xf32> to vector<8x1xf32>
      %49 = vector.shape_cast %46 : vector<8x1xf32> to vector<1x8x1xf32>
      tpu.vector_store %arg6[%c0_28, %c0_29, %c0_30], %49 {strides = array<i32>} : memref<1x8x1xf32, #tpu.memory_space<vmem>>, vector<1x8x1xf32>,
    } else {
    }
    return
  }
  func.func @transform_0(%arg0: i32, %arg1: i32, %arg2: i32) -> (i32, i32, i32) {
    %c0_i32 = arith.constant 0 : i32
    %c0_i32_0 = arith.constant 0 : i32
    return %arg0, %arg1, %c0_i32 : i32, i32, i32
  }
  func.func @transform_1(%arg0: i32, %arg1: i32, %arg2: i32) -> (i32, i32, i32) {
    %c0_i32 = arith.constant 0 : i32
    %c0_i32_0 = arith.constant 0 : i32
    return %arg0, %arg2, %c0_i32 : i32, i32, i32
  }
  func.func @transform_2(%arg0: i32, %arg1: i32, %arg2: i32) -> (i32, i32, i32) {
    %c1_i32 = arith.constant 1 : i32
    %0 = arith.addi %arg1, %c1_i32 : i32
    %c2_i32 = arith.constant 2 : i32
    %c0_i32 = arith.constant 0 : i32
    %1 = arith.cmpi eq, %c2_i32, %c0_i32 : i32
    %c1_i32_0 = arith.constant 1 : i32
    %2 = arith.select %1, %c1_i32_0, %c2_i32 : i32
    %3 = arith.remsi %0, %2 : i32
    %c0_i32_1 = arith.constant 0 : i32
    %4 = arith.cmpi ne, %3, %c0_i32_1 : i32
    %c0_i32_2 = arith.constant 0 : i32
    %5 = arith.cmpi slt, %3, %c0_i32_2 : i32
    %c0_i32_3 = arith.constant 0 : i32
    %6 = arith.cmpi slt, %2, %c0_i32_3 : i32
    %7 = arith.xori %5, %6 : i1
    %8 = arith.andi %7, %4 : i1
    %9 = arith.addi %3, %2 : i32
    %10 = arith.select %8, %9, %3 : i32
    %c0_i32_4 = arith.constant 0 : i32
    %c0_i32_5 = arith.constant 0 : i32
    return %arg0, %10, %c0_i32_4 : i32, i32, i32
  }
  func.func @transform_3(%arg0: i32, %arg1: i32, %arg2: i32) -> (i32, i32, i32) {
    %c0_i32 = arith.constant 0 : i32
    %c0_i32_0 = arith.constant 0 : i32
    return %arg0, %arg1, %c0_i32 : i32, i32, i32
  }
}

</mosaic_0001>

<bundles_post_ra>
// kernel: tpu_custom_call.1
= control target key start
LH: loop header
LB: loop body
LE: loop exit
PB: predicated region body
PF: predicated region fallthrough
CT: control target
= control target key end

     0   :  { %s1611_s0 = inlined_call_operand.hbm [shape: f32[4,16,128], index: 0, kind: input, shape index: {}]   ;;  %s1612_s1 = inlined_call_operand.hbm [shape: f32[4,16,128], index: 1, kind: input, shape index: {}]   ;;  %s1613_s2 = inlined_call_operand.hbm [shape: f32[4,16,128], index: 2, kind: input, shape index: {}]   ;;  %s1614_s3 = inlined_call_operand.vmem [shape: f32[4,16,1], index: 3, kind: output, shape index: {}]  }
   0x1   :  { %1639 = sst [smem:[#allocation26_spill]] %s1611_s0 }
   0x2   :  { %1640 = sst [smem:[#allocation27_spill]] %s1612_s1 }
   0x3   :  { %1641 = sst [smem:[#allocation28_spill]] %s1613_s2 }
   0x4   :  { %1642 = sst [smem:[#allocation29_spill]] %s1614_s3 }
   0x5   :  { %8 = vsyncpa [#allocation5], 0 }
   0x6   :  { %10 = vsyncpa [#allocation5 + $0x1], 0 }
   0x7   :  { %11 = vsyncpa [#allocation7], 0 }
   0x8   :  { %13 = vsyncpa [#allocation7 + $0x1], 0  ;;  %s1147_s12 = smov 0   ;;  %s1149_s13 = smov 0  }
   0x9   :  { %s1151_s14 = smov 0   ;;  %s1153_s15 = smov 0  }
   0xa   :  { %s1155_s16 = smov 0   ;;  %s1157_s17 = smov 0  }
   0xb   :  { %s1159_s18 = smov 0   ;;  %s1161_s19 = smov 0  }
   0xc   :  { %s1163_s20 = smov 0   ;;  %s1165_s21 = smov 0  }
   0xd   :  { %s1167_s22 = smov 0   ;;  %s1169_s23 = smov 0  }
   0xe   :  { %s1171_s24 = smov 0   ;;  %s1173_s25 = smov 0  }
   0xf   :  { %s1175_s26 = smov 0   ;;  %s1177_s27 = smov 0  }
  0x10 LB: > { %1643 = sst [smem:[#allocation12_spill]] %s1055_s12  ;;  %s1615_s28 = sadd.s32 4294967295, %s1115_s27   ;;  %s1115_s27 = sphi %s1177_s27, %s19_s27   ;;  %s1111_s26 = sphi %s1175_s26, %s1723_s26   ;;  %s1107_s25 = sphi %s1173_s25, %s1722_s25   ;;  %s1103_s24 = sphi %s1171_s24, %s1721_s24   ;;  %s1099_s23 = sphi %s1169_s23, %s1709_s23   ;;  %s1095_s22 = sphi %s1167_s22, %s1720_s22   ;;  %s1091_s21 = sphi %s1165_s21, %s1719_s21   ;;  %s1087_s20 = sphi %s1163_s20, %s1718_s20   ;;  %s1083_s19 = sphi %s1161_s19, %s1717_s19   ;;  %s1079_s18 = sphi %s1159_s18, %s1708_s18   ;;  %s1075_s17 = sphi %s1157_s17, %s1716_s17   ;;  %s1071_s16 = sphi %s1155_s16, %s1715_s16   ;;  %s1067_s15 = sphi %s1153_s15, %s1707_s15   ;;  %s1063_s14 = sphi %s1151_s14, %s1714_s14   ;;  %s1059_s13 = sphi %s1149_s13, %s1713_s13   ;;  %s1055_s12 = sphi %s1147_s12, %s1712_s12  }
  0x11   : > { %1644 = sst [smem:[#allocation13_spill]] %s1071_s16  ;;  %s31_s29 = sadd.s32 1, %s1103_s24 }
  0x12   : > { %1645 = sst [smem:[#allocation14_spill]] %s1083_s19  ;;  %p1227_p0 = scmp.ge.s32.totalorder %s31_s29, 2 }
  0x13   : > { %1646 = sst [smem:[#allocation15_spill]] %s1091_s21  ;;  %p1623_p1 = scmp.eq.s32.totalorder %s1115_s27, 0 }
  0x14   : > { %1647 = sst [smem:[#allocation16_spill]] %s1095_s22  ;;  %p1235_p2 = scmp.eq.s32.totalorder %s1615_s28, 0 }
  0x15   : > { %1648 = sst [smem:[#allocation17_spill]] %s1099_s23  ;;  %s1725_s29 = smov (%p1227_p0, %s31_s29), 0 }
  0x16   : > { %1649 = sst [smem:[#allocation18_spill]] %s1111_s26  ;;  %p82_p3 = scmp.ne.s32.totalorder %s1075_s17, %s1071_s16 }
  0x17   : > { %s1651_s5 = scalar_select %p1235_p2, 1, 0 }
  0x18   : > { %p88_p4 = scmp.ne.s32.totalorder %s1071_s16, %s1067_s15  ;;  %p1251_p5 = por %p82_p3, %p1623_p1 }
  0x19   : > { %1652 = sst [smem:[#allocation19_spill]] %s1651_s5  ;;  %p1622_p7 = scmp.lt.s32.totalorder %s1115_s27, 16 }
  0x1a   : > { %p1257_p6 = por %p88_p4, %p1235_p2  ;;  %s1263_s10 = sshll.u32 %s1111_s26, 1 }
  0x1b   : > { %s214_s11 = sand.u32 1, %s1115_s27   ;;  %s216_s28 = sand.u32 1, %s1075_s17  }
  0x1c   : > { %s1654_s9 = scalar_select %p1257_p6, 1, 0 }
  0x1d   : > { %s694_s6 = sshll.u32 %s216_s28, 3  ;;  %s223_s15 = sadd.s32 %s1103_s24, %s1263_s10 }
  0x1e   : > { %1655 = sst [smem:[#allocation20_spill]] %s1654_s9  ;;  %s696_s7 = sshll.u32 %s223_s15, 7 }
  0x1f   : > { %s1656_s1 = sld [smem:[#allocation27_spill]]  ;;  %s218_s22 = scalar_lea.vmem [#allocation6], %s694_s6 }
  0x20   : > { %s227_s23 = sshll.u32 %s218_s22, 4  ;;  %p1280_p8 = pnand %p1622_p7, %p1251_p5  ;;  %s1274_s23 = int_to_ptr.vmem [resolvable:$true] %s227_s23 }
  0x21   : > { %s1286_s3 = scalar_lea.sflag [#allocation7], %s214_s11 }
  0x22   : > { %1658 = sst [smem:[#allocation21_spill]] %s1286_s3  ;;  %p889_p12 = pneg %p1280_p8 }
  0x25   : > { %s1272_s21 = scalar_lea.hbm %s1656_s1, %s696_s7  ;;  %s892_s6 = scalar_lea.hbm %s1656_s1, 1024 }
  0x26   : > { %s887_s28 = scalar_lea.hbm %s1272_s21, 128  ;;  %p893_p4 = scmp.lt.u32.totalorder %s1272_s21, %s1656_s1 }
  0x27   : > { %p888_p11 = scmp.ne.s32.totalorder %s1272_s21, %s887_s28  ;;  %p894_p5 = scmp.lt.u32.totalorder %s892_s6, %s887_s28 }
  0x28   : > { %p896_p1 = scmp.lt.u32.totalorder %s887_s28, %s1272_s21 }
  0x29   : > { %p890_p13 = pnand %p889_p12, %p888_p11  ;;  %p895_p7 = por %p894_p5, %p893_p4 }
  0x2b   : > { %p891_p3 = pneg %p890_p13  ;;  %p897_p9 = por %p896_p1, %p895_p7 }
  0x2d   : > { %p898_p10 = pnand %p897_p9, %p891_p3 }
  0x2f   : > { %901 = shalt.err (!%p898_p10)
}
  0x30   : > { %s902_s11 = scalar_lea.vmem %s1274_s23, 128  ;;  %s1117_s15 = smov [#allocation6]  }
  0x31   : > { %p903_p11 = scmp.ne.s32.totalorder %s1274_s23, %s902_s11  ;;  %s907_s22 = sshll.u32 %s1117_s15, 4  ;;  %s908_s22 = int_to_ptr.vmem [resolvable:$false] %s907_s22 }
  0x32   : > { %s909_s4 = scalar_lea.vmem %s908_s22, 256  ;;  %p910_p2 = scmp.lt.s32.totalorder %s1274_s23, %s908_s22 }
  0x33   : > { %p905_p13 = pnand %p903_p11, %p889_p12  ;;  %p911_p4 = scmp.lt.s32.totalorder %s909_s4, %s902_s11 }
  0x35   : > { %p906_p6 = pneg %p905_p13  ;;  %p912_p5 = por %p911_p4, %p910_p2 }
  0x37   : > { %p913_p1 = pnand %p912_p5, %p906_p6 }
  0x39   : > { %916 = shalt.err (!%p913_p1)
}
  0x3a   : > { %735 = dma.hbm_to_vmem [thread:$0]  (!%p1280_p8), %s1272_s21, 128, %s1274_s23, %s1286_s3  }
  0x3b   : > { %p1659_p2 = scmp.lt.s32.totalorder %s1115_s27, 17  ;;  %p1660_p6 = scmp.ge.s32.totalorder %s1115_s27, 1 }
  0x3c   : > { %s1323_s28 = sadd.s32 1, %s1107_s25  ;;  %s47_s6 = sadd.s32 1, %s1087_s20 }
  0x3d   : > { %p1318_p7 = pnand %p1660_p6, %p1659_p2  ;;  %p54_p9 = scmp.ne.s32.totalorder %s1087_s20, %s1083_s19 }
  0x3e   : > { %s35_s7 = scalar_select %p1227_p0, %s1323_s28, %s1107_s25 }
  0x3f   : > { %s1661_s9 = scalar_select %p1318_p7, 1, 0 }
  0x40   : > { %p60_p10 = scmp.ne.s32.totalorder %s1083_s19, %s1079_s18  ;;  %p36_p12 = scmp.ge.s32.totalorder %s35_s7, 2 }
  0x41   : > { %1662 = sst [smem:[#allocation22_spill]] %s1661_s9  ;;  %p1663_p3 = scmp.eq.s32.totalorder %s1115_s27, 0 }
  0x42   : > { %p1665_p11 = scmp.ne.s32.totalorder %s1651_s5, 0  ;;  %s1727_s7 = smov (%p36_p12, %s35_s7), 0 }
  0x43   : > { %p1336_p8 = por %p1663_p3, %p54_p9  ;;  %1668 = sst [smem:[#allocation24_spill]] %s1727_s7 }
  0x44   : > { %p1342_p13 = por %p1665_p11, %p60_p10  ;;  %s1669_s30 = sadd.s32 1, %s1111_s26 }
  0x45   : > { %s1729_s30 = smov (!%p36_p12, %s1669_s30), %s1111_s26  ;;  %s43_s18 = ssub.s32 %s1107_s25, %s1727_s7 }
  0x46   : > { %s1666_s23 = scalar_select %p1342_p13, 1, 0 }
  0x47   : > { %p40_p0 = scmp.ge.s32.totalorder %s1729_s30, 4  ;;  %s111_s11 = sadd.s32 1, %s1727_s7 }
  0x48   : > { %1667 = sst [smem:[#allocation23_spill]] %s1666_s23  ;;  %s113_s15 = ssub.s32 0, %s111_s11 }
  0x49   : > { %s1731_s30 = smov (%p40_p0, %s1729_s30), 0  ;;  %s686_s22 = smin.u32 %s113_s15, %s111_s11 }
  0x4a   : > { %1670 = sst [smem:[#allocation25_spill]] %s1731_s30  ;;  %s194_s4 = sand.u32 1, %s1087_s20  }
  0x4b   : > { %s1360_s1 = ssub.s32 %s1111_s26, %s1731_s30  ;;  %s1362_s16 = sand.u32 1, %s686_s22  }
  0x4c   : > { %s44_s23 = sor.u32 %s43_s18, %s1360_s1  ;;  %s1671_s8 = ssub.s32 %s1103_s24, %s1725_s29 }
  0x4d   : > { %s72_s19 = sor.u32 %s1671_s8, %s1360_s1  ;;  %p45_p4 = scmp.eq.s32.totalorder %s44_s23, 0 }
  0x4e   : > { %p73_p5 = scmp.eq.s32.totalorder %s72_s19, 0  ;;  %s691_s7 = sshll.u32 %s194_s4, 3 }
  0x4f   : > { %s1370_s9 = scalar_select %p45_p4, %s1087_s20, %s47_s6  }
  0x50   : > { %s1672_s3 = sadd.s32 1, %s1075_s17  ;;  %s203_s11 = sadd.s32 %s1107_s25, %s1263_s10 }
  0x51   : > { %s1375_s2 = scalar_select %p73_p5, %s1075_s17, %s1672_s3  }
  0x52   : > { %s693_s15 = sshll.u32 %s203_s11, 7  ;;  %s198_s5 = scalar_lea.vmem [#allocation4], %s691_s7 }
  0x53   : > { %s207_s30 = sshll.u32 %s198_s5, 4  ;;  %s1673_s0 = sld [smem:[#allocation26_spill]]  ;;  %s1384_s30 = int_to_ptr.vmem [resolvable:$true] %s207_s30 }
  0x54   : > { %p1674_p1 = scmp.lt.s32.totalorder %s1115_s27, 16  ;;  %s195_s5 = scalar_lea.sflag [#allocation5], %s194_s4 }
  0x56   : > { %p1390_p2 = pnand %p1674_p1, %p1336_p8 }
  0x58   : > { %p919_p9 = pneg %p1390_p2 }
  0x59   : > { %s1382_s22 = scalar_lea.hbm %s1673_s0, %s693_s15  ;;  %s922_s6 = scalar_lea.hbm %s1673_s0, 1024 }
  0x5a   : > { %s917_s3 = scalar_lea.hbm %s1382_s22, 128  ;;  %p923_p3 = scmp.lt.u32.totalorder %s1382_s22, %s1673_s0 }
  0x5b   : > { %p918_p6 = scmp.ne.s32.totalorder %s1382_s22, %s917_s3  ;;  %p924_p8 = scmp.lt.u32.totalorder %s922_s6, %s917_s3 }
  0x5c   : > { %p926_p4 = scmp.lt.u32.totalorder %s917_s3, %s1382_s22 }
  0x5d   : > { %p920_p10 = pnand %p919_p9, %p918_p6  ;;  %p925_p0 = por %p924_p8, %p923_p3 }
  0x5f   : > { %p921_p12 = pneg %p920_p10  ;;  %p927_p5 = por %p926_p4, %p925_p0 }
  0x61   : > { %p928_p1 = pnand %p927_p5, %p921_p12 }
  0x63   : > { %931 = shalt.err (!%p928_p1)
}
  0x64   : > { %s932_s23 = scalar_lea.vmem %s1384_s30, 128  ;;  %s1118_s18 = smov [#allocation4]  }
  0x65   : > { %p933_p6 = scmp.ne.s32.totalorder %s1384_s30, %s932_s23  ;;  %s937_s8 = sshll.u32 %s1118_s18, 4  ;;  %s938_s8 = int_to_ptr.vmem [resolvable:$false] %s937_s8 }
  0x66   : > { %s939_s4 = scalar_lea.vmem %s938_s8, 256  ;;  %p940_p7 = scmp.lt.s32.totalorder %s1384_s30, %s938_s8 }
  0x67   : > { %p935_p10 = pnand %p933_p6, %p919_p9  ;;  %p941_p3 = scmp.lt.s32.totalorder %s939_s4, %s932_s23 }
  0x69   : > { %p936_p13 = pneg %p935_p10  ;;  %p942_p8 = por %p941_p3, %p940_p7 }
  0x6b   : > { %p943_p0 = pnand %p942_p8, %p936_p13 }
  0x6d   : > { %946 = shalt.err (!%p943_p0)
}
  0x6e   : > { %s1676_s11 = sld [smem:[#allocation12_spill]]  ;;  %s1677_s15 = ssub.s32 0, %s1323_s28 }
  0x6f   : > { %732 = dma.hbm_to_vmem [thread:$0]  (!%p1390_p2), %s1382_s22, 128, %s1384_s30, %s195_s5  }
  0x70   : > { %s683_s12 = smin.u32 %s1677_s15, %s1323_s28  ;;  %s129_s26 = sadd.s32 1, %s1063_s14 }
  0x71   : > { %s102_s19 = sand.u32 1, %s683_s12   ;;  %p136_p7 = scmp.ne.s32.totalorder %s1063_s14, %s1059_s13 }
  0x72   : > { %p685_p13 = scmp.lt.s32.totalorder %s102_s19, 0  ;;  %s109_s6 = sadd.s32 2, %s102_s19 }
  0x73   : > { %p688_p9 = scmp.lt.s32.totalorder %s1362_s16, 0  ;;  %s122_s7 = sadd.s32 2, %s1362_s16 }
  0x74   : > { %s1733_s6 = smov (!%p685_p13, %s109_s6), %s102_s19  ;;  %p1679_p12 = scmp.eq.s32.totalorder %s1115_s27, 0 }
  0x75   : > { %s1735_s7 = smov (!%p688_p9, %s122_s7), %s1362_s16  ;;  %p142_p2 = scmp.ne.s32.totalorder %s1059_s13, %s1676_s11 }
  0x76   : > { %p1430_p4 = por %p136_p7, %p1679_p12  ;;  %s125_s28 = ssub.s32 %s1733_s6, %s1735_s7 }
  0x77   : > { %s236_s30 = sand.u32 1, %s1063_s14   ;;  %s126_s22 = sor.u32 %s125_s28, %s1360_s1 }
  0x78   : > { %p1440_p5 = por %p142_p2, %p1665_p11  ;;  %p127_p1 = scmp.eq.s32.totalorder %s126_s22, 0 }
  0x79   : > { %s697_s23 = sshll.u32 %s236_s30, 3  ;;  %s256_s18 = sadd.s32 %s1263_s10, %s1733_s6 }
  0x7a   : > { %s1446_s16 = scalar_select %p127_p1, %s1063_s14, %s129_s26  }
  0x7b   : > { %s702_s8 = sshll.u32 %s256_s18, 7  ;;  %s238_s4 = scalar_lea.vmem [#allocation8], %s697_s23 }
  0x7c   : > { %s260_s15 = sshll.u32 %s238_s4, 4  ;;  %s1682_s0 = sld [smem:[#allocation28_spill]]  ;;  %s1453_s15 = int_to_ptr.vmem [resolvable:$true] %s260_s15 }
  0x7d   : > { %p1683_p11 = scmp.lt.s32.totalorder %s1115_s27, 16 }
  0x7f   : > { %p1459_p6 = pnand %p1683_p11, %p1430_p4 }
  0x81   : > { %p949_p3 = pneg %p1459_p6 }
  0x82   : > { %s1451_s11 = scalar_lea.hbm %s1682_s0, %s702_s8  ;;  %s952_s6 = scalar_lea.hbm %s1682_s0, 1024 }
  0x83   : > { %s947_s10 = scalar_lea.hbm %s1451_s11, 128  ;;  %p953_p7 = scmp.lt.u32.totalorder %s1451_s11, %s1682_s0 }
  0x84   : > { %p948_p10 = scmp.ne.s32.totalorder %s1451_s11, %s947_s10  ;;  %p954_p13 = scmp.lt.u32.totalorder %s952_s6, %s947_s10 }
  0x85   : > { %p956_p12 = scmp.lt.u32.totalorder %s947_s10, %s1451_s11 }
  0x86   : > { %p950_p8 = pnand %p949_p3, %p948_p10  ;;  %p955_p9 = por %p954_p13, %p953_p7 }
  0x88   : > { %p951_p0 = pneg %p950_p8  ;;  %p957_p4 = por %p956_p12, %p955_p9 }
  0x8a   : > { %p958_p2 = pnand %p957_p4, %p951_p0 }
  0x8c   : > { %961 = shalt.err (!%p958_p2)
}
  0x8d   : > { %s962_s28 = scalar_lea.vmem %s1453_s15, 128  ;;  %s1119_s30 = smov [#allocation8]  }
  0x8e   : > { %p963_p1 = scmp.ne.s32.totalorder %s1453_s15, %s962_s28  ;;  %s967_s22 = sshll.u32 %s1119_s30, 4  ;;  %s968_s22 = int_to_ptr.vmem [resolvable:$false] %s967_s22 }
  0x8f   : > { %s969_s23 = scalar_lea.vmem %s968_s22, 256  ;;  %p970_p8 = scmp.lt.s32.totalorder %s1453_s15, %s968_s22 }
  0x90   : > { %p965_p11 = pnand %p963_p1, %p949_p3  ;;  %p971_p7 = scmp.lt.s32.totalorder %s969_s23, %s962_s28 }
  0x92   : > { %p966_p10 = pneg %p965_p11  ;;  %p972_p13 = por %p971_p7, %p970_p8 }
  0x94   : > { %p973_p9 = pnand %p972_p13, %p966_p10 }
  0x96   : > { %976 = shalt.err (!%p973_p9)
}
  0x97   : > { %s1685_s18 = sld [smem:[#allocation21_spill]]  ;;  %s1686_s8 = sld [smem:[#allocation22_spill]] }
  0x9d   : > { %738 = dma.hbm_to_vmem [thread:$0]  (!%p1459_p6), %s1451_s11, 128, %s1453_s15, %s1685_s18  }
  0x9e   : > { %p1687_p0 = scmp.ne.s32.totalorder %s1686_s8, 0 }
  0x9f   : > { %s1688_s4 = sld [smem:[#allocation14_spill]] (!%p1687_p0)  ;;  %s1689_s12 = sld [smem:[#allocation23_spill]] (!%p1687_p0) }
  0xa0   : > { %269 = sbr.rel (%p1687_p0) target bundleno = 1443 (0x5a3), region = 32 }
  0xa5   : > { %s271_s19 = sand.u32 (!%p1687_p0), 1, %s1688_s4   ;;  %p1690_p3 = scmp.ne.s32.totalorder (!%p1687_p0), %s1689_s12, 0 }
  0xa6   : > { %s1492_s10 = sshll.u32 (!%p1687_p0), %s271_s19, 3  ;;  %s272_s3 = scalar_lea.sflag (!%p1687_p0), [#allocation5], %s271_s19 }
  0xa7   : > { %s275_s26 = scalar_lea.vmem [#allocation4], %s1492_s10 }
  0xa8   : > { %1042 = dma.done.wait (%p1690_p3), %s272_s3, 128  }
  0xa9   : > { %1044 = vsyncadd (%p1690_p3), %s272_s3, 4294967168  ;;  %s1691_s1 = sadd.s32 4294967295, %s1115_s27   ;;  %s1692_s6 = sld [smem:[#allocation13_spill]] }
  0xaa   : > { %s1693_s15 = sld [smem:[#allocation20_spill]]  ;;  %s280_s11 = sand.u32 1, %s1691_s1  }
  0xab   : > { %s281_s28 = scalar_lea.sflag [#allocation7], %s280_s11 }
  0xaf   : > { %s282_s7 = sand.u32 1, %s1692_s6  }
  0xb0   : > { %s705_s21 = sshll.u32 %s282_s7, 3  ;;  %p1694_p6 = scmp.ne.s32.totalorder %s1693_s15, 0 }
  0xb1   : > { %s284_s30 = scalar_lea.vmem [#allocation6], %s705_s21 }
  0xb2   : > { %1046 = dma.done.wait (%p1694_p6), %s281_s28, 128  }
  0xb3   : > { %1048 = vsyncadd (%p1694_p6), %s281_s28, 4294967168  ;;  %s291_s22 = sand.u32 1, %s1059_s13  }
  0xb4   : > { %s1507_s23 = sshll.u32 %s291_s22, 3 }
  0xb5   : > { %s293_s18 = scalar_lea.vmem [#allocation8], %s1507_s23 }
  0xb6   : > { %1050 = dma.done.wait (%p1440_p5), %s281_s28, 128  }
  0xb7   : > { %1052 = vsyncadd (%p1440_p5), %s281_s28, 4294967168  ;;  %s1695_s8 = sld [smem:[#allocation17_spill]]  ;;  %s1696_s4 = sld [smem:[#allocation16_spill]] }
  0xb8   : > { %s1697_s12 = sld [smem:[#allocation15_spill]]  ;;  %s1698_s11 = sld [smem:[#allocation29_spill]] }
  0xbd   : > { %p342_p12 = scmp.lt.s32.totalorder %s1695_s8, 3  ;;  %p344_p4 = scmp.lt.s32.totalorder %s1696_s4, 1 }
  0xbe   : > { %p350_p2 = scmp.eq.s32.totalorder %s1697_s12, 0  ;;  %p709_p5 = scmp.ne.s32.totalorder %s1697_s12, 0 }
  0xbf   : > { %s1737_s8 = smov (!%p342_p12, %s1695_s8), 3  ;;  %s1739_s4 = smov (!%p344_p4, %s1696_s4), 1 }
  0xc0   : > { %s707_s19 = sshll.u32 %s1737_s8, 1  ;;  %353 = sbr.rel (%p709_p5) target bundleno = 199 (0xc7), region = 48  ;;  %vm354_vm0 = vcmask (!%p709_p5), 7168   ;;  %v1120_v0 = vmov (!%p709_p5), -1e+30   ;;  %v1121_v1 = vmov (!%p709_p5), 0.0  }
  0xc1   : > { %s347_s3 = sadd.s32 %s707_s19, %s1739_s4  ;;  %355 = vst.msk [vmem:[#allocation2] sm:$0xff] (!%p709_p5), %vm354_vm0, %v1120_v0  ;;  %356 = vst.msk [vmem:[#allocation3] sm:$0xff] (!%p709_p5), %vm354_vm0, %v1121_v1 }
  0xc2   : > { %s708_s1 = sshll.u32 %s347_s3, 3 }
  0xc3   : > { %s1522_s7 = scalar_lea.vmem %s1698_s11, %s708_s1 }
  0xc7 PF: > { %v358_v2 = vld [vmem:[%s284_s30] sm:$0xff]  ;;  %s1699_s5 = sld [smem:[#allocation15_spill]]  ;;  %s1700_s21 = sld [smem:[#allocation16_spill]]  ;;  %v1122_v3 = vmov 0.0   ;;  %vm1123_vm1 = vmmov 0   ;;  %v357_v4 = vld [vmem:[%s275_s26] sm:$0xff] }
  0xc8   : > { %718 = vmatprep.subr.mxu0 %v1122_v3  ;;  %720 = vmatprep.mubr.msk.f32.mxu0 %vm1123_vm1, %v1122_v3 }
  0xc9   : > { %719 = vmatpush3.xpose.msra.mxu0 %v358_v2 }
  0xcc   : > { %721 = vmatmul.mubr.f32.vlgmr.msra.gmra.mrb[0].mxu0 %v357_v4 }
  0xcd   : > { %p429_p1 = scmp.eq.s32.totalorder %s1700_s21, %s1699_s5  ;;  %p431_p10 = scmp.eq.s32.totalorder %s1699_s5, 1 }
  0xcf   : > { %p430_p11 = por %p429_p1, %p350_p2 }
  0xd1   : > { %p1532_p8 = por %p431_p10, %p430_p11 }
  0xd2   : > { %s1702_s30 = sld [smem:[#allocation16_spill]] (%p1532_p8)  ;;  %s1703_s22 = sld [smem:[#allocation15_spill]] (%p1532_p8)  ;;  %v437_v7 = vlaneseq (%p1532_p8)  ;;  %v1124_v10 = vmov (%p1532_p8), 0   ;;  %vm454_vm5 = vcmask (%p1532_p8), 64512   ;;  %v453_v19 = vld [vmem:[#allocation2] sm:$0xff] (%p1532_p8)  ;;  %vm476_vm7 = vcmask (%p1532_p8), 7168  }
  0xd3   : > { %875 = vset.pattern.permute.xlu0 (%p1532_p8), %v1124_v10  ;;  %v462_v30 = vld [vmem:[#allocation3] sm:$0xff] (%p1532_p8) }
  0xd4   : > { %v438_v11 = vshrl.u32 (%p1532_p8), %v437_v7, 7  ;;  %v443_v12 = vand.u32 (%p1532_p8), 127, %v437_v7 }
  0xd8   : > { %s710_s8 = sshll.u32 (%p1532_p8), %s1702_s30, 3  ;;  %s711_s4 = sshll.u32 (%p1532_p8), %s1703_s22, 3 }
  0xd9   : > { %v439_v8 = vstv (%p1532_p8), %s710_s8  ;;  %v444_v9 = vstv (%p1532_p8), %s711_s4 }
  0xda   : > { %v440_v13 = vadd.s32 (%p1532_p8), %v439_v8, %v438_v11  ;;  %v445_v14 = vadd.s32 (%p1532_p8), %v444_v9, %v443_v12 }
  0xdc   : > { %vm447_vm2 = vcmp.ge.s32.totalorder (%p1532_p8), %v445_v14, 8  ;;  %vm446_vm3 = vcmp.ne.s32.totalorder (%p1532_p8), %v440_v13, %v445_v14 }
  0xdd   : > { %v448_v15 = vsel (%p1532_p8), %vm447_vm2, 8, %v1124_v10 }
  0xde   : > { %v449_v16 = vsub.s32 (%p1532_p8), %v445_v14, %v448_v15 }
  0xe0   : > { %vm450_vm4 = vcmp.lt.s32.totalorder (%p1532_p8), %v449_v16, 4 }
  0xe1   : > { %vm451_vm6 = vmand (%p1532_p8), %vm446_vm3, %vm450_vm4 }
 0x19a   : > { %435 = sbr.rel (!%p1532_p8) target bundleno = 851 (0x353), region = 52 }
 0x19f   : > { %v425_v5 = vpop.f32.mrb[0].mxu0 }
 0x1a0   : > { %v722_v6 = vpop.f32.mrb[1].mxu0  ;;  %v452_v17 = vsel (%p1532_p8), %vm451_vm6, %v425_v5, -1e+30 }
 0x1a1   : > { %v455_v18 = vsel %vm454_vm5, %v452_v17, -inf }
 0x1a2   : > { %456 = vmax.xlane.f32.xlu0 %v455_v18 }
 0x22f   : > { %v457_v20 = vpop.xlane.xlu0 %456 }
 0x230   : > { %v458_v21 = vmax.f32 %v453_v19, %v457_v20 }
 0x232   : > { %v459_v22 = vsub.f32 %v453_v19, %v458_v21  ;;  %478 = vst.msk [vmem:[#allocation2] sm:$0xff] %vm476_vm7, %v458_v21  ;;  %466 = vperm.xlu0 %875, %v458_v21  }
 0x234   : > { %v460_v28 = vmul.f32 1.442695, %v459_v22 }
 0x2b1   : > { %v467_v23 = vpop.permute.xlu0 %466 }
 0x2b2   : > { %v469_v24 = vsub.f32 %v452_v17, %v467_v23 }
 0x2b4   : > { %v470_v25 = vmul.f32 1.442695, %v469_v24 }
 0x2b6   : > { %876 = vpow2.f32 %v470_v25 }
 0x2b7   : > { %878 = vpow2.f32 %v460_v28 }
 0x2c0   : > { %v877_v26 = vpop.eup %876 }
 0x2c1   : > { %v472_v27 = vsel %vm454_vm5, %v877_v26, 0.0  ;;  %v879_v29 = vpop.eup %878 }
 0x2c2   : > { %473 = vadd.xlane.f32.xlu1 %v472_v27  ;;  %v463_v31 = vmul.f32 %v879_v29, %v462_v30 }
 0x34f   : > { %v474_v32 = vpop.xlane.xlu1 %473 }
 0x350   : > { %v475_v33 = vadd.f32 %v474_v32, %v463_v31 }
 0x352   : > { %477 = vst.msk [vmem:[#allocation3] sm:$0xff] %vm476_vm7, %v475_v33 }
 0x353 PF: > { %481 = sbr.rel (%p1532_p8) target bundleno = 1286 (0x506), region = 56  ;;  %vm483_vm8 = vcmask (!%p1532_p8), 64512   ;;  %v1125_v35 = vmov (!%p1532_p8), 0   ;;  %v482_v36 = vld [vmem:[#allocation2] sm:$0xff] (!%p1532_p8)  ;;  %vm505_vm9 = vcmask (!%p1532_p8), 7168  }
 0x354   : > { %v484_v34 = vsel (!%p1532_p8), %vm483_vm8, %v425_v5, -inf  ;;  %880 = vset.pattern.permute.xlu0 (!%p1532_p8), %v1125_v35 }
 0x355   : > { %485 = vmax.xlane.f32.xlu0 (!%p1532_p8), %v484_v34 }
 0x359   : > { %v491_v47 = vld [vmem:[#allocation3] sm:$0xff] (!%p1532_p8) }
 0x3e2   : > { %v486_v37 = vpop.xlane.xlu0 %485 }
 0x3e3   : > { %v487_v38 = vmax.f32 %v482_v36, %v486_v37 }
 0x3e5   : > { %v488_v39 = vsub.f32 %v482_v36, %v487_v38  ;;  %507 = vst.msk [vmem:[#allocation2] sm:$0xff] %vm505_vm9, %v487_v38  ;;  %495 = vperm.xlu0 %880, %v487_v38  }
 0x3e7   : > { %v489_v45 = vmul.f32 1.442695, %v488_v39 }
 0x464   : > { %v496_v40 = vpop.permute.xlu0 %495 }
 0x465   : > { %v498_v41 = vsub.f32 %v425_v5, %v496_v40 }
 0x467   : > { %v499_v42 = vmul.f32 1.442695, %v498_v41 }
 0x469   : > { %881 = vpow2.f32 %v499_v42 }
 0x46a   : > { %883 = vpow2.f32 %v489_v45 }
 0x473   : > { %v882_v43 = vpop.eup %881 }
 0x474   : > { %v501_v44 = vsel %vm483_vm8, %v882_v43, 0.0  ;;  %v884_v46 = vpop.eup %883 }
 0x475   : > { %502 = vadd.xlane.f32.xlu1 %v501_v44  ;;  %v492_v48 = vmul.f32 %v884_v46, %v491_v47 }
 0x502   : > { %v503_v49 = vpop.xlane.xlu1 %502 }
 0x503   : > { %v504_v50 = vadd.f32 %v503_v49, %v492_v48 }
 0x505   : > { %506 = vst.msk [vmem:[#allocation3] sm:$0xff] %vm505_vm9, %v504_v50 }
 0x506 PF: > { %s1704_s12 = sld [smem:[#allocation15_spill]] }
 0x50c   : > { %p712_p7 = scmp.ne.s32.totalorder %s1704_s12, 1 }
 0x50d   : > { %s1705_s19 = sld [smem:[#allocation16_spill]] (!%p712_p7)  ;;  %v516_v51 = vld [vmem:[%s275_s26] sm:$0xff] (!%p712_p7)  ;;  %v512_v54 = vld [vmem:[#allocation3] sm:$0xff] (!%p712_p7)  ;;  %v523_v55 = vlaneseq (!%p712_p7)  ;;  %v1126_v61 = vmov (!%p712_p7), 0   ;;  %v511_v63 = vld [vmem:[#allocation2] sm:$0xff] (!%p712_p7)  ;;  %vm532_vm12 = vcmask (!%p712_p7), 7168  }
 0x50e   : > { %510 = sbr.rel (%p712_p7) target bundleno = 1443 (0x5a3), region = 60  ;;  %v517_v52 = vld [vmem:[%s293_s18] sm:$0xff] (!%p712_p7)  ;;  %885 = vlog2.f32 (!%p712_p7), %v512_v54 }
 0x50f   : > { %v518_v53 = vmul.f32 (!%p712_p7), %v517_v52, %v516_v51  ;;  %v524_v56 = vshrl.u32 (!%p712_p7), %v523_v55, 7 }
 0x511   : > { %519 = vadd.xlane.f32.xlu0 (!%p712_p7), %v518_v53 }
 0x513   : > { %s713_s3 = sshll.u32 (!%p712_p7), %s1705_s19, 3 }
 0x514   : > { %v525_v57 = vstv (!%p712_p7), %s713_s3 }
 0x515   : > { %v526_v58 = vadd.s32 %v525_v57, %v524_v56 }
 0x517   : > { %vm527_vm10 = vcmp.ge.s32.totalorder %v526_v58, 8 }
 0x518   : > { %v886_v59 = vpop.eup %885  ;;  %v528_v62 = vsel %vm527_vm10, 8, %v1126_v61 }
 0x519   : > { %v514_v60 = vmul.f32 0.6931472, %v886_v59  ;;  %v529_v0 = vsub.s32 %v526_v58, %v528_v62 }
 0x51b   : > { %v515_v1 = vadd.f32 %v514_v60, %v511_v63  ;;  %vm530_vm11 = vcmp.lt.s32.totalorder %v529_v0, 4 }
 0x59e   : > { %v520_v2 = vpop.xlane.xlu0 %519 }
 0x59f   : > { %v521_v3 = vsub.f32 %v515_v1, %v520_v2 }
 0x5a1   : > { %v531_v4 = vsel %vm530_vm11, %v521_v3, 0.0 }
 0x5a2   : > { %533 = vst.msk [vmem:[%s1522_s7] sm:$0xff] %vm532_vm12, %v531_v4 }
 0x5a3 PF: > { %s19_s27 = sadd.s32 1, %s1115_s27   ;;  %s1707_s15 = sld [smem:[#allocation13_spill]] }
 0x5a4   : > { %p1558_p13 = scmp.ge.s32.totalorder %s19_s27, 18   ;;  %s1708_s18 = sld [smem:[#allocation14_spill]] }
 0x5a5   : > { %s1709_s23 = sld [smem:[#allocation18_spill]]  ;;  %s1710_s26 = sld [smem:[#allocation24_spill]] }
 0x5a6   : > { %s1711_s1 = sld [smem:[#allocation25_spill]]  ;;  %s1712_s12 = smov %s1059_s13 }
 0x5a7   : > { %s1713_s13 = smov %s1063_s14  ;;  %s1714_s14 = smov %s1446_s16 }
 0x5a8   : > { %s1715_s16 = smov %s1075_s17  ;;  %s1716_s17 = smov %s1375_s2 }
 0x5a9   : > { %s1717_s19 = smov %s1087_s20  ;;  %s1718_s20 = smov %s1370_s9 }
 0x5aa   : > { %s1719_s21 = smov %s1103_s24  ;;  %s1720_s22 = smov %s1107_s25 }
 0x5ab   : > { %s1721_s24 = smov %s1725_s29  ;;  %s1722_s25 = smov %s1710_s26 }
 0x5ac   : > { %s1723_s26 = smov %s1711_s1  ;;  %18 = sbr.rel (!%p1558_p13) target bundleno = 16 (0x10), region = 112 }
 0x5b3   :  { %561 = vsyncpa [#allocation5], 1 }
 0x5b4   :  { %563 = vsyncpa [#allocation5 + $0x1], 1 }
 0x5b5   :  { %564 = vsyncpa [#allocation7], 1 }
 0x5b6   :  { %566 = vsyncpa [#allocation7 + $0x1], 1 }

</bundles_post_ra>
